<compile_context>
chip_gen: v7x
topology: tpu7x:2x2x1
jax: 0.10.0
libtpu: 0.0.40
codegen_flags: <defaults>
</compile_context>

<pallas_src>
import jax
import jax.numpy as jnp
from jax import lax
from jax.experimental import pallas as pl
from jax.experimental.pallas import tpu as pltpu


def _criterion_kernel(text_ref, img_ref, lhs_ref, rhs_ref, out_ref, rs_acc, ms_acc):
    kb = pl.program_id(1)

    @pl.when(kb == 0)
    def _():
        rs_acc[...] = jnp.zeros_like(rs_acc)
        ms_acc[...] = jnp.zeros_like(ms_acc)

    # Native-dtype operands straight to the MXU (no f32 upcast); f32 accumulation.
    lhs = lhs_ref[0]                        # (2N, D)   [t ; at]
    rhs = rhs_ref[0]                        # (Tk, D)   column strip of [im ; ai]
    m2 = lhs.shape[0]
    n = m2 // 2
    tk = rhs.shape[0]

    # One fused matmul per column strip:  S = [t;at] @ [im;ai]_strip^T   -> (2N, Tk)
    s = lax.dot_general(lhs, rhs, (((1,), (1,)), ((), ())),
                        preferred_element_type=jnp.float32)
    b = jnp.exp(s)                          # single EUP exp over one contiguous slab

    # Positive-pair entries live where (global col % N) == (row % N).
    row = lax.broadcasted_iota(jnp.int32, (m2, tk), 0)
    col = lax.broadcasted_iota(jnp.int32, (m2, tk), 1) + kb * tk
    pos_mask = (row % n) == (col % n)

    rs_acc[...] += jnp.sum(b, axis=-1, keepdims=True)                           # full row-sums
    ms_acc[...] += jnp.sum(jnp.where(pos_mask, b, 0.0), axis=-1, keepdims=True)  # positive terms

    @pl.when(kb == pl.num_programs(1) - 1)
    def _():
        rs = rs_acc[...]                    # (2N, 1)
        ms = ms_acc[...]                    # (2N, 1)
        sim_matrix = rs[:n] + rs[n:]        # (N, 1)  sum over all 4 NxN exp blocks
        pos_sim = ms[:n] + ms[n:]           # (N, 1)  the 4 positive ("diagonal") entries
        loss_vec = jnp.log(sim_matrix) - jnp.log(pos_sim)     # == -log(pos_sim / sim_matrix)

        # KL( softmax(image_preds) || exp(log_softmax(text_preds)) ), summed over classes.
        text = text_ref[0].astype(jnp.float32)                # (N, C)
        img = img_ref[0].astype(jnp.float32)                  # (N, C)

        tshift = text - jnp.max(text, axis=-1, keepdims=True)
        log_p_text = tshift - jnp.log(jnp.sum(jnp.exp(tshift), axis=-1, keepdims=True))

        ishift = img - jnp.max(img, axis=-1, keepdims=True)
        iexp = jnp.exp(ishift)
        denom = jnp.sum(iexp, axis=-1, keepdims=True)
        p_img = iexp * pl.reciprocal(denom, approx=True)      # EUP, separate VLIW slot
        log_p_img = ishift - jnp.log(denom)                   # analytic log-softmax (no log(p_img))

        kl = p_img * (log_p_img - log_p_text)                 # (N, C)
        variance = jnp.sum(kl, axis=-1, keepdims=True)        # (N, 1)
        exp_variance = jnp.exp(-variance)

        # Fused single reduction: mean(loss*w) + mean(var) == mean(loss*w + var).
        domain_loss = jnp.mean(loss_vec * exp_variance + variance)
        out_ref[...] = jnp.reshape(domain_loss, (1, 1, 1))


def _pick_col_block(m2, cap=512):
    """Largest column-strip width <= cap that tiles 2N and respects sublane alignment."""
    if m2 <= cap:
        return m2
    start = cap - (cap % 8)
    for tk in range(start, 7, -8):
        if m2 % tk == 0:
            return tk
    # TODO(synk): ragged 2N with no multiple-of-8 divisor <= cap falls back to full width.
    return m2


def criterion_multimodal(text_preds, image_preds, t_feats, at_feats, i_feats, ai_feats,
                         *, col_block=None):
    num_datasets, n_rows, n_cls = text_preds.shape
    _, _, d_feat = t_feats.shape
    m2 = 2 * n_rows

    # Wrapper-side layout plumbing: stack [t; at] and [im; ai] along the row axis so the
    # kernel needs a single fused matmul (and a single exp slab) per column strip.
    lhs = jnp.concatenate([t_feats, at_feats], axis=1)       # (nd, 2N, D)
    rhs = jnp.concatenate([i_feats, ai_feats], axis=1)       # (nd, 2N, D)

    if col_block is None:
        col_block = _pick_col_block(m2)
    assert m2 % col_block == 0
    assert col_block == m2 or col_block % 8 == 0
    n_col_blocks = m2 // col_block

    pred_spec = pl.BlockSpec((1, n_rows, n_cls), lambda d, kb: (d, 0, 0))
    lhs_spec = pl.BlockSpec((1, m2, d_feat), lambda d, kb: (d, 0, 0))
    rhs_spec = pl.BlockSpec((1, col_block, d_feat), lambda d, kb: (d, kb, 0))
    out_spec = pl.BlockSpec((1, 1, 1), lambda d, kb: (d, 0, 0))

    # Explicit VMEM budget (v5e scoped default is only 16 MiB); cap at 64 MiB for v7x.
    lane = 128
    itemsize = jnp.dtype(t_feats.dtype).itemsize
    budget = (
        2 * (m2 * d_feat + col_block * d_feat) * itemsize       # double-buffered feature blocks
        + 2 * 2 * n_rows * max(n_cls, lane) * 4                 # double-buffered pred blocks
        + 4 * m2 * max(col_block, lane) * 4                     # similarity-slab temporaries (f32)
        + 2 * m2 * lane * 4                                     # row-sum accumulators
    )
    vmem_limit = min(64 << 20, max(32 << 20, 2 * budget))

    out = pl.pallas_call(
        _criterion_kernel,
        out_shape=jax.ShapeDtypeStruct((num_datasets, 1, 1), jnp.float32),
        grid_spec=pltpu.PrefetchScalarGridSpec(
            num_scalar_prefetch=0,
            grid=(num_datasets, n_col_blocks),
            in_specs=[pred_spec, pred_spec, lhs_spec, rhs_spec],
            out_specs=out_spec,
            scratch_shapes=[
                pltpu.VMEM((m2, 1), jnp.float32),   # running full row-sums
                pltpu.VMEM((m2, 1), jnp.float32),   # running positive-pair sums
            ],
        ),
        compiler_params=pltpu.CompilerParams(
            dimension_semantics=("parallel", "arbitrary"),
            vmem_limit_bytes=vmem_limit,
        ),
    )(text_preds, image_preds, lhs, rhs)
    return jnp.sum(out)


def _reference(text_preds, image_preds, t_feats, at_feats, i_feats, ai_feats):
    total = 0.0
    for d in range(text_preds.shape[0]):
        t, at, im, ai = t_feats[d], at_feats[d], i_feats[d], ai_feats[d]
        pos = (jnp.exp(jnp.sum(t * im, -1)) + jnp.exp(jnp.sum(t * ai, -1))
               + jnp.exp(jnp.sum(at * im, -1)) + jnp.exp(jnp.sum(at * ai, -1)))
        sim = jnp.sum(jnp.exp(t @ im.T) + jnp.exp(t @ ai.T)
                      + jnp.exp(at @ im.T) + jnp.exp(at @ ai.T), -1)
        loss = -jnp.log(pos / sim)
        log_p_text = jax.nn.log_softmax(text_preds[d], axis=1)
        p_img = jax.nn.softmax(image_preds[d], axis=1)
        variance = jnp.sum(p_img * (jnp.log(p_img) - log_p_text), axis=1)
        total = total + jnp.mean(loss * jnp.exp(-variance)) + jnp.mean(variance)
    return total


if __name__ == "__main__":
    key = jax.random.PRNGKey(0)
    num_datasets, N, C, D = 2, 8, 4, 32
    ks = jax.random.split(key, 6)
    text_preds = jax.random.normal(ks[0], (num_datasets, N, C), jnp.float32)
    image_preds = jax.random.normal(ks[1], (num_datasets, N, C), jnp.float32)
    # small-scale features so exp() stays well-conditioned (matches the reference's regime)
    t_feats = 0.1 * jax.random.normal(ks[2], (num_datasets, N, D), jnp.float32)
    at_feats = 0.1 * jax.random.normal(ks[3], (num_datasets, N, D), jnp.float32)
    i_feats = 0.1 * jax.random.normal(ks[4], (num_datasets, N, D), jnp.float32)
    ai_feats = 0.1 * jax.random.normal(ks[5], (num_datasets, N, D), jnp.float32)

    # col_block=8 (< 2N=16) deliberately exercises the streamed column-strip reduction path.
    out = criterion_multimodal(text_preds, image_preds, t_feats, at_feats, i_feats, ai_feats,
                               col_block=8)
    out = jax.block_until_ready(out)

    ref = _reference(text_preds, image_preds, t_feats, at_feats, i_feats, ai_feats)
    # tolerance accounts for the approx EUP reciprocal in the softmax normalization
    assert jnp.allclose(out, ref, rtol=1e-3, atol=1e-5), (out, ref)
    print("KERNEL_OK")
</pallas_src>

<mosaic_0001>
module attributes {stable_mosaic.version = 11 : i64} {
  func.func @_criterion_kernel(%arg0: i32, %arg1: i32, %arg2: memref<1x8x4xf32, #tpu.memory_space<vmem>>, %arg3: memref<1x8x4xf32, #tpu.memory_space<vmem>>, %arg4: memref<1x16x32xf32, #tpu.memory_space<vmem>>, %arg5: memref<1x8x32xf32, #tpu.memory_space<vmem>>, %arg6: memref<1x1x1xf32, #tpu.memory_space<vmem>>, %arg7: memref<16x1xf32, #tpu.memory_space<vmem>>, %arg8: memref<16x1xf32, #tpu.memory_space<vmem>>) attributes {dimension_semantics = [#tpu.dimension_semantics<parallel>, #tpu.dimension_semantics<arbitrary>], iteration_bounds = array<i64: 2, 2>, scalar_prefetch = 0 : i64, scratch_operands = 2 : i64, tpu.core_type = #tpu.core_type<tc>, window_params = [{transform_indices = @transform_0, window_bounds = array<i64: 1, 8, 4>}, {transform_indices = @transform_1, window_bounds = array<i64: 1, 8, 4>}, {transform_indices = @transform_2, window_bounds = array<i64: 1, 16, 32>}, {transform_indices = @transform_3, window_bounds = array<i64: 1, 8, 32>}, {transform_indices = @transform_4, window_bounds = array<i64: 1, 1, 1>}]} {
    %c0_i32 = arith.constant 0 : i32
    %0 = arith.cmpi eq, %arg1, %c0_i32 : i32
    %1 = arith.extui %0 : i1 to i32
    %c0_i32_0 = arith.constant 0 : i32
    %2 = arith.cmpi ne, %1, %c0_i32_0 : i32
    scf.if %2 {
      %cst_30 = arith.constant 0.000000e+00 : f32
      %62 = vector.broadcast %cst_30 : f32 to vector<16x1xf32>
      %c0_31 = arith.constant 0 : index
      %c0_32 = arith.constant 0 : index
      %63 = vector.load %arg7[%c0_31, %c0_32] : memref<16x1xf32, #tpu.memory_space<vmem>>, vector<16x1xf32>
      tpu.vector_store %arg7[%c0_31, %c0_32], %62 {strides = array<i32>} : memref<16x1xf32, #tpu.memory_space<vmem>>, vector<16x1xf32>,
      %cst_33 = arith.constant 0.000000e+00 : f32
      %64 = vector.broadcast %cst_33 : f32 to vector<16x1xf32>
      %c0_34 = arith.constant 0 : index
      %c0_35 = arith.constant 0 : index
      %65 = vector.load %arg8[%c0_34, %c0_35] : memref<16x1xf32, #tpu.memory_space<vmem>>, vector<16x1xf32>
      tpu.vector_store %arg8[%c0_34, %c0_35], %64 {strides = array<i32>} : memref<16x1xf32, #tpu.memory_space<vmem>>, vector<16x1xf32>,
    } else {
    }
    %c0 = arith.constant 0 : index
    %c0_1 = arith.constant 0 : index
    %c0_2 = arith.constant 0 : index
    %3 = vector.load %arg4[%c0, %c0_1, %c0_2] : memref<1x16x32xf32, #tpu.memory_space<vmem>>, vector<1x16x32xf32>
    %4 = vector.shape_cast %3 : vector<1x16x32xf32> to vector<16x32xf32>
    %c0_3 = arith.constant 0 : index
    %c0_4 = arith.constant 0 : index
    %c0_5 = arith.constant 0 : index
    %5 = vector.load %arg5[%c0_3, %c0_4, %c0_5] : memref<1x8x32xf32, #tpu.memory_space<vmem>>, vector<1x8x32xf32>
    %6 = vector.shape_cast %5 : vector<1x8x32xf32> to vector<8x32xf32>
    %cst = arith.constant dense<0.000000e+00> : vector<16x8xf32>
    %7 = tpu.matmul %4, %6, %cst {dimension_numbers = #tpu.dot_dimension_numbers<[1], [1], [0], [0], [0, 0, 1, 0], [], []>} : vector<16x32xf32>, vector<8x32xf32>, vector<16x8xf32> -> vector<16x8xf32>
    %8 = math.exp %7 : vector<16x8xf32>
    %9 = tpu.iota {dimensions = array<i32: 0>} : vector<16x8xi32>
    %10 = tpu.iota {dimensions = array<i32: 1>} : vector<16x8xi32>
    %c8_i32 = arith.constant 8 : i32
    %11 = arith.muli %arg1, %c8_i32 : i32
    %12 = vector.broadcast %11 : i32 to vector<16x8xi32>
    %13 = arith.addi %10, %12 : vector<16x8xi32>
    %c8_i32_6 = arith.constant 8 : i32
    %c0_i32_7 = arith.constant 0 : i32
    %14 = arith.cmpi eq, %c8_i32_6, %c0_i32_7 : i32
    %c1_i32 = arith.constant 1 : i32
    %15 = arith.select %14, %c1_i32, %c8_i32_6 : i32
    %16 = vector.broadcast %15 : i32 to vector<16x8xi32>
    %17 = arith.remsi %9, %16 : vector<16x8xi32>
    %c0_i32_8 = arith.constant 0 : i32
    %18 = vector.broadcast %c0_i32_8 : i32 to vector<16x8xi32>
    %19 = arith.cmpi ne, %17, %18 : vector<16x8xi32>
    %c0_i32_9 = arith.constant 0 : i32
    %20 = vector.broadcast %c0_i32_9 : i32 to vector<16x8xi32>
    %21 = arith.cmpi slt, %17, %20 : vector<16x8xi32>
    %c0_i32_10 = arith.constant 0 : i32
    %22 = arith.cmpi slt, %15, %c0_i32_10 : i32
    %23 = vector.broadcast %22 : i1 to vector<16x8xi1>
    %24 = vector.broadcast %23 : vector<16x8xi1> to vector<16x8xi1>
    %25 = arith.xori %21, %24 : vector<16x8xi1>
    %26 = arith.andi %25, %19 : vector<16x8xi1>
    %27 = vector.broadcast %15 : i32 to vector<16x8xi32>
    %28 = arith.addi %17, %27 : vector<16x8xi32>
    %29 = arith.select %26, %28, %17 : vector<16x8xi1>, vector<16x8xi32>
    %c8_i32_11 = arith.constant 8 : i32
    %c0_i32_12 = arith.constant 0 : i32
    %30 = arith.cmpi eq, %c8_i32_11, %c0_i32_12 : i32
    %c1_i32_13 = arith.constant 1 : i32
    %31 = arith.select %30, %c1_i32_13, %c8_i32_11 : i32
    %32 = vector.broadcast %31 : i32 to vector<16x8xi32>
    %33 = arith.remsi %13, %32 : vector<16x8xi32>
    %c0_i32_14 = arith.constant 0 : i32
    %34 = vector.broadcast %c0_i32_14 : i32 to vector<16x8xi32>
    %35 = arith.cmpi ne, %33, %34 : vector<16x8xi32>
    %c0_i32_15 = arith.constant 0 : i32
    %36 = vector.broadcast %c0_i32_15 : i32 to vector<16x8xi32>
    %37 = arith.cmpi slt, %33, %36 : vector<16x8xi32>
    %c0_i32_16 = arith.constant 0 : i32
    %38 = arith.cmpi slt, %31, %c0_i32_16 : i32
    %39 = vector.broadcast %38 : i1 to vector<16x8xi1>
    %40 = vector.broadcast %39 : vector<16x8xi1> to vector<16x8xi1>
    %41 = arith.xori %37, %40 : vector<16x8xi1>
    %42 = arith.andi %41, %35 : vector<16x8xi1>
    %43 = vector.broadcast %31 : i32 to vector<16x8xi32>
    %44 = arith.addi %33, %43 : vector<16x8xi32>
    %45 = arith.select %42, %44, %33 : vector<16x8xi1>, vector<16x8xi32>
    %46 = arith.cmpi eq, %29, %45 : vector<16x8xi32>
    %c0_17 = arith.constant 0 : index
    %c0_18 = arith.constant 0 : index
    %47 = vector.load %arg7[%c0_17, %c0_18] : memref<16x1xf32, #tpu.memory_space<vmem>>, vector<16x1xf32>
    %cst_19 = arith.constant dense<0.000000e+00> : vector<16xf32>
    %48 = vector.multi_reduction <add>, %8, %cst_19 [1] : vector<16x8xf32> to vector<16xf32>
    %49 = vector.shape_cast %48 : vector<16xf32> to vector<16x1xf32>
    %50 = arith.addf %47, %49 : vector<16x1xf32>
    %c0_20 = arith.constant 0 : index
    %c0_21 = arith.constant 0 : index
    %51 = vector.load %arg7[%c0_20, %c0_21] : memref<16x1xf32, #tpu.memory_space<vmem>>, vector<16x1xf32>
    tpu.vector_store %arg7[%c0_20, %c0_21], %50 {strides = array<i32>} : memref<16x1xf32, #tpu.memory_space<vmem>>, vector<16x1xf32>,
    %c0_22 = arith.constant 0 : index
    %c0_23 = arith.constant 0 : index
    %52 = vector.load %arg8[%c0_22, %c0_23] : memref<16x1xf32, #tpu.memory_space<vmem>>, vector<16x1xf32>
    %cst_24 = arith.constant 0.000000e+00 : f32
    %53 = vector.broadcast %cst_24 : f32 to vector<16x8xf32>
    %54 = arith.select %46, %8, %53 : vector<16x8xi1>, vector<16x8xf32>
    %cst_25 = arith.constant dense<0.000000e+00> : vector<16xf32>
    %55 = vector.multi_reduction <add>, %54, %cst_25 [1] : vector<16x8xf32> to vector<16xf32>
    %56 = vector.shape_cast %55 : vector<16xf32> to vector<16x1xf32>
    %57 = arith.addf %52, %56 : vector<16x1xf32>
    %c0_26 = arith.constant 0 : index
    %c0_27 = arith.constant 0 : index
    %58 = vector.load %arg8[%c0_26, %c0_27] : memref<16x1xf32, #tpu.memory_space<vmem>>, vector<16x1xf32>
    tpu.vector_store %arg8[%c0_26, %c0_27], %57 {strides = array<i32>} : memref<16x1xf32, #tpu.memory_space<vmem>>, vector<16x1xf32>,
    %c1_i32_28 = arith.constant 1 : i32
    %59 = arith.cmpi eq, %arg1, %c1_i32_28 : i32
    %60 = arith.extui %59 : i1 to i32
    %c0_i32_29 = arith.constant 0 : i32
    %61 = arith.cmpi ne, %60, %c0_i32_29 : i32
    scf.if %61 {
      %c0_30 = arith.constant 0 : index
      %c0_31 = arith.constant 0 : index
      %62 = vector.load %arg7[%c0_30, %c0_31] : memref<16x1xf32, #tpu.memory_space<vmem>>, vector<16x1xf32>
      %c0_32 = arith.constant 0 : index
      %c0_33 = arith.constant 0 : index
      %63 = vector.load %arg8[%c0_32, %c0_33] : memref<16x1xf32, #tpu.memory_space<vmem>>, vector<16x1xf32>
      %64 = vector.extract_strided_slice %62 {offsets = [0, 0], sizes = [8, 1], strides = [1, 1]} : vector<16x1xf32> to vector<8x1xf32>
      %65 = vector.extract_strided_slice %62 {offsets = [8, 0], sizes = [8, 1], strides = [1, 1]} : vector<16x1xf32> to vector<8x1xf32>
      %66 = arith.addf %64, %65 : vector<8x1xf32>
      %67 = vector.extract_strided_slice %63 {offsets = [0, 0], sizes = [8, 1], strides = [1, 1]} : vector<16x1xf32> to vector<8x1xf32>
      %68 = vector.extract_strided_slice %63 {offsets = [8, 0], sizes = [8, 1], strides = [1, 1]} : vector<16x1xf32> to vector<8x1xf32>
      %69 = arith.addf %67, %68 : vector<8x1xf32>
      %70 = math.log %66 : vector<8x1xf32>
      %71 = math.log %69 : vector<8x1xf32>
      %72 = arith.subf %70, %71 : vector<8x1xf32>
      %c0_34 = arith.constant 0 : index
      %c0_35 = arith.constant 0 : index
      %c0_36 = arith.constant 0 : index
      %73 = vector.load %arg2[%c0_34, %c0_35, %c0_36] : memref<1x8x4xf32, #tpu.memory_space<vmem>>, vector<1x8x4xf32>
      %74 = vector.shape_cast %73 : vector<1x8x4xf32> to vector<8x4xf32>
      %c0_37 = arith.constant 0 : index
      %c0_38 = arith.constant 0 : index
      %c0_39 = arith.constant 0 : index
      %75 = vector.load %arg3[%c0_37, %c0_38, %c0_39] : memref<1x8x4xf32, #tpu.memory_space<vmem>>, vector<1x8x4xf32>
      %76 = vector.shape_cast %75 : vector<1x8x4xf32> to vector<8x4xf32>
      %cst_40 = arith.constant dense<0xFF800000> : vector<8xf32>
      %77 = vector.multi_reduction <maximumf>, %74, %cst_40 [1] : vector<8x4xf32> to vector<8xf32>
      %78 = vector.shape_cast %77 : vector<8xf32> to vector<8x1xf32>
      %79 = vector.broadcast %78 : vector<8x1xf32> to vector<8x4xf32>
      %80 = arith.subf %74, %79 : vector<8x4xf32>
      %81 = math.exp %80 : vector<8x4xf32>
      %cst_41 = arith.constant dense<0.000000e+00> : vector<8xf32>
      %82 = vector.multi_reduction <add>, %81, %cst_41 [1] : vector<8x4xf32> to vector<8xf32>
      %83 = vector.shape_cast %82 : vector<8xf32> to vector<8x1xf32>
      %84 = math.log %83 : vector<8x1xf32>
      %85 = vector.broadcast %84 : vector<8x1xf32> to vector<8x4xf32>
      %86 = arith.subf %80, %85 : vector<8x4xf32>
      %cst_42 = arith.constant dense<0xFF800000> : vector<8xf32>
      %87 = vector.multi_reduction <maximumf>, %76, %cst_42 [1] : vector<8x4xf32> to vector<8xf32>
      %88 = vector.shape_cast %87 : vector<8xf32> to vector<8x1xf32>
      %89 = vector.broadcast %88 : vector<8x1xf32> to vector<8x4xf32>
      %90 = arith.subf %76, %89 : vector<8x4xf32>
      %91 = math.exp %90 : vector<8x4xf32>
      %cst_43 = arith.constant dense<0.000000e+00> : vector<8xf32>
      %92 = vector.multi_reduction <add>, %91, %cst_43 [1] : vector<8x4xf32> to vector<8xf32>
      %93 = vector.shape_cast %92 : vector<8xf32> to vector<8x1xf32>
      %94 = tpu.reciprocal %93 {approx = true} : vector<8x1xf32> -> vector<8x1xf32>
      %95 = vector.broadcast %94 : vector<8x1xf32> to vector<8x4xf32>
      %96 = arith.mulf %91, %95 : vector<8x4xf32>
      %97 = math.log %93 : vector<8x1xf32>
      %98 = vector.broadcast %97 : vector<8x1xf32> to vector<8x4xf32>
      %99 = arith.subf %90, %98 : vector<8x4xf32>
      %100 = arith.subf %99, %86 : vector<8x4xf32>
      %101 = arith.mulf %96, %100 : vector<8x4xf32>
      %cst_44 = arith.constant dense<0.000000e+00> : vector<8xf32>
      %102 = vector.multi_reduction <add>, %101, %cst_44 [1] : vector<8x4xf32> to vector<8xf32>
      %103 = vector.shape_cast %102 : vector<8xf32> to vector<8x1xf32>
      %cst_45 = arith.constant 0.000000e+00 : f32
      %104 = vector.broadcast %cst_45 : f32 to vector<8x1xf32>
      %105 = arith.subf %104, %103 : vector<8x1xf32>
      %106 = math.exp %105 : vector<8x1xf32>
      %107 = arith.mulf %72, %106 : vector<8x1xf32>
      %108 = arith.addf %107, %103 : vector<8x1xf32>
      %109 = vector.shape_cast %108 : vector<8x1xf32> to vector<1x8x1xf32>
      %cst_46 = arith.constant dense<0.000000e+00> : vector<1xf32>
      %110 = vector.multi_reduction <add>, %109, %cst_46 [1, 2] : vector<1x8x1xf32> to vector<1xf32>
      %111 = vector.shape_cast %110 : vector<1xf32> to vector<1x1x1xf32>
      %112 = vector.extract %111[0, 0, 0] : f32 from vector<1x1x1xf32>
      %cst_47 = arith.constant 8.000000e+00 : f32
      %113 = arith.divf %112, %cst_47 : f32
      %114 = vector.broadcast %113 : f32 to vector<1x1x1xf32>
      %c0_48 = arith.constant 0 : index
      %c0_49 = arith.constant 0 : index
      %c0_50 = arith.constant 0 : index
      %115 = vector.load %arg6[%c0_48, %c0_49, %c0_50] : memref<1x1x1xf32, #tpu.memory_space<vmem>>, vector<1x1x1xf32>
      tpu.vector_store %arg6[%c0_48, %c0_49, %c0_50], %114 {strides = array<i32>} : memref<1x1x1xf32, #tpu.memory_space<vmem>>, vector<1x1x1xf32>,
    } else {
    }
    return
  }
  func.func @transform_0(%arg0: i32, %arg1: i32) -> (i32, i32, i32) {
    %c0_i32 = arith.constant 0 : i32
    %c0_i32_0 = arith.constant 0 : i32
    %c0_i32_1 = arith.constant 0 : i32
    return %arg0, %c0_i32, %c0_i32_0 : i32, i32, i32
  }
  func.func @transform_1(%arg0: i32, %arg1: i32) -> (i32, i32, i32) {
    %c0_i32 = arith.constant 0 : i32
    %c0_i32_0 = arith.constant 0 : i32
    %c0_i32_1 = arith.constant 0 : i32
    return %arg0, %c0_i32, %c0_i32_0 : i32, i32, i32
  }
  func.func @transform_2(%arg0: i32, %arg1: i32) -> (i32, i32, i32) {
    %c0_i32 = arith.constant 0 : i32
    %c0_i32_0 = arith.constant 0 : i32
    %c0_i32_1 = arith.constant 0 : i32
    return %arg0, %c0_i32, %c0_i32_0 : i32, i32, i32
  }
  func.func @transform_3(%arg0: i32, %arg1: i32) -> (i32, i32, i32) {
    %c0_i32 = arith.constant 0 : i32
    %c0_i32_0 = arith.constant 0 : i32
    return %arg0, %arg1, %c0_i32 : i32, i32, i32
  }
  func.func @transform_4(%arg0: i32, %arg1: i32) -> (i32, i32, i32) {
    %c0_i32 = arith.constant 0 : i32
    %c0_i32_0 = arith.constant 0 : i32
    %c0_i32_1 = arith.constant 0 : i32
    return %arg0, %c0_i32, %c0_i32_0 : i32, i32, i32
  }
}

</mosaic_0001>

<bundles_post_ra>
// kernel: tpu_custom_call.1
= control target key start
LH: loop header
LB: loop body
LE: loop exit
PB: predicated region body
PF: predicated region fallthrough
CT: control target
= control target key end

     0   :  { %9 = vsyncpa [#allocation5], 0  ;;  %s1072_s0 = inlined_call_operand.vmem [shape: f32[2,8,4], index: 0, kind: input, shape index: {}]   ;;  %s1073_s1 = inlined_call_operand.vmem [shape: f32[2,8,4], index: 1, kind: input, shape index: {}]   ;;  %s1074_s2 = inlined_call_operand.vmem [shape: f32[2,16,32], index: 2, kind: input, shape index: {}]   ;;  %s1075_s3 = inlined_call_operand.hbm [shape: f32[2,16,32], index: 3, kind: input, shape index: {}]   ;;  %s1076_s4 = inlined_call_operand.vmem [shape: f32[2,1,1], index: 4, kind: output, shape index: {}]  }
   0x1   :  { %11 = vsyncpa [#allocation5 + $0x1], 0  ;;  %s884_s15 = smov 0   ;;  %s886_s16 = smov 0  }
   0x2   :  { %s888_s17 = smov 0   ;;  %s890_s18 = smov 0  }
   0x3   :  { %s892_s19 = smov 0   ;;  %s894_s20 = smov 0  }
   0x4   :  { %s896_s21 = smov 0   ;;  %s898_s22 = smov 0  }
   0x5 LB: > { %s634_s23 = sadd.s32 4294967295, %s855_s22   ;;  %s26_s24 = sadd.s32 1, %s847_s20  ;;  %s855_s22 = sphi %s898_s22, %s17_s22   ;;  %s851_s21 = sphi %s896_s21, %s1088_s21   ;;  %s847_s20 = sphi %s894_s20, %s1087_s20   ;;  %s843_s19 = sphi %s892_s19, %s1086_s19   ;;  %s839_s18 = sphi %s890_s18, %s1085_s18   ;;  %s835_s17 = sphi %s888_s17, %s1084_s17   ;;  %s831_s16 = sphi %s886_s16, %s1083_s16   ;;  %s827_s15 = sphi %s884_s15, %s1082_s15  }
   0x6   : > { %p27_p0 = scmp.ge.s32.totalorder %s26_s24, 2  ;;  %s29_s25 = sadd.s32 1, %s851_s21 }
   0x7   : > { %s116_s26 = sadd.s32 1, %s835_s17  ;;  %p123_p1 = scmp.ne.s32.totalorder %s835_s17, %s831_s16 }
   0x8   : > { %s1090_s24 = smov (%p27_p0, %s26_s24), 0  ;;  %s1092_s25 = smov (!%p27_p0, %s29_s25), %s851_s21 }
   0x9   : > { %s112_s27 = ssub.s32 %s847_s20, %s1090_s24  ;;  %p124_p2 = scmp.eq.s32.totalorder %s855_s22, 0 }
   0xa   : > { %p31_p3 = scmp.ge.s32.totalorder %s1092_s25, 2  ;;  %p129_p4 = scmp.ne.s32.totalorder %s831_s16, %s827_s15 }
   0xb   : > { %p935_p5 = por %p124_p2, %p123_p1  ;;  %p130_p6 = scmp.eq.s32.totalorder %s634_s23, 0 }
   0xc   : > { %s1094_s25 = smov (%p31_p3, %s1092_s25), 0  ;;  %p673_p8 = scmp.lt.s32.totalorder %s855_s22, 4 }
   0xd   : > { %p941_p7 = por %p130_p6, %p129_p4  ;;  %s111_s30 = ssub.s32 %s851_s21, %s1094_s25 }
   0xe   : > { %s113_s5 = sor.u32 %s112_s27, %s111_s30  ;;  %s201_s6 = sand.u32 1, %s835_s17  }
   0xf   : > { %p114_p9 = scmp.eq.s32.totalorder %s113_s5, 0  ;;  %s638_s7 = sshll.u32 %s201_s6, 3 }
  0x10   : > { %s639_s8 = sshll.u32 %s851_s21, 1  ;;  %s205_s12 = scalar_lea.vmem [#allocation4], %s638_s7 }
  0x11   : > { %s951_s9 = scalar_select %p114_p9, %s835_s17, %s116_s26  }
  0x12   : > { %s210_s10 = sadd.s32 %s847_s20, %s639_s8  ;;  %s214_s13 = sshll.u32 %s205_s12, 4  ;;  %s959_s13 = int_to_ptr.vmem [resolvable:$true] %s214_s13 }
  0x13   : > { %s640_s11 = sshll.u32 %s210_s10, 7  ;;  %p965_p10 = pnand %p673_p8, %p935_p5 }
  0x14   : > { %s957_s23 = scalar_lea.hbm %s1075_s3, %s640_s11  ;;  %s202_s27 = scalar_lea.sflag [#allocation5], %s201_s6 }
  0x15   : > { %s759_s30 = scalar_lea.hbm %s957_s23, 128  ;;  %p761_p0 = pneg %p965_p10 }
  0x16   : > { %p760_p13 = scmp.ne.s32.totalorder %s957_s23, %s759_s30  ;;  %s764_s7 = scalar_lea.hbm %s1075_s3, 512 }
  0x17   : > { %p765_p3 = scmp.lt.u32.totalorder %s957_s23, %s1075_s3  ;;  %p766_p4 = scmp.lt.u32.totalorder %s764_s7, %s759_s30 }
  0x18   : > { %p762_p1 = pnand %p761_p0, %p760_p13  ;;  %p768_p6 = scmp.lt.u32.totalorder %s759_s30, %s957_s23 }
  0x19   : > { %p767_p5 = por %p766_p4, %p765_p3 }
  0x1a   : > { %p763_p2 = pneg %p762_p1 }
  0x1b   : > { %p769_p8 = por %p768_p6, %p767_p5 }
  0x1d   : > { %p770_p9 = pnand %p769_p8, %p763_p2 }
  0x1f   : > { %773 = shalt.err (!%p770_p9)
}
  0x20   : > { %s774_s6 = scalar_lea.vmem %s959_s13, 128  ;;  %s857_s11 = smov [#allocation4]  }
  0x21   : > { %p775_p13 = scmp.ne.s32.totalorder %s959_s13, %s774_s6  ;;  %s779_s12 = sshll.u32 %s857_s11, 4  ;;  %s780_s12 = int_to_ptr.vmem [resolvable:$false] %s779_s12 }
  0x22   : > { %s781_s14 = scalar_lea.vmem %s780_s12, 256  ;;  %p782_p12 = scmp.lt.s32.totalorder %s959_s13, %s780_s12 }
  0x23   : > { %p777_p1 = pnand %p775_p13, %p761_p0  ;;  %p783_p3 = scmp.lt.s32.totalorder %s781_s14, %s774_s6 }
  0x25   : > { %p778_p11 = pneg %p777_p1  ;;  %p784_p4 = por %p783_p3, %p782_p12 }
  0x27   : > { %p785_p5 = pnand %p784_p4, %p778_p11 }
  0x29   : > { %788 = shalt.err (!%p785_p5)
}
  0x2a   : > { %672 = dma.hbm_to_vmem [thread:$0]  (!%p965_p10), %s957_s23, 128, %s959_s13, %s202_s27  }
  0x2b   : > { %p1080_p2 = scmp.lt.s32.totalorder %s855_s22, 5  ;;  %p1081_p6 = scmp.ge.s32.totalorder %s855_s22, 1 }
  0x2d   : > { %p220_p0 = pnand %p1081_p6, %p1080_p2 }
  0x2e   : > { %s225_s15 = sand.u32 (!%p220_p0), 1, %s831_s16  }
  0x2f   : > { %223 = sbr.rel (%p220_p0) target bundleno = 998 (0x3e6), region = 36  ;;  %s642_s30 = sshll.u32 (!%p220_p0), %s225_s15, 3 }
  0x30   : > { %s226_s5 = scalar_lea.sflag (!%p220_p0), [#allocation5], %s225_s15  ;;  %s229_s28 = scalar_lea.vmem (!%p220_p0), [#allocation4], %s642_s30 }
  0x36   : > { %822 = dma.done.wait (%p941_p7), %s226_s5, 128  }
  0x37   : > { %824 = vsyncadd (%p941_p7), %s226_s5, 4294967168  ;;  %p265_p11 = scmp.lt.s32.totalorder %s843_s19, 1  ;;  %p647_p7 = scmp.ne.s32.totalorder %s839_s18, 0 }
  0x38   : > { %vm285_vm0 = vcmask (!%p647_p7), 7168   ;;  %v858_v0 = vmov (!%p647_p7), 0.0  }
  0x39   : > { %s1096_s19 = smov (!%p265_p11, %s843_s19), 1  ;;  %284 = sbr.rel (%p647_p7) target bundleno = 64 (0x40), region = 44 }
  0x3a   : > { %s643_s13 = sshll.u32 %s1096_s19, 3  ;;  %s656_s23 = sshll.u32 %s1096_s19, 4  ;;  %286 = vst.msk [vmem:[#allocation2] sm:$0xff] (!%p647_p7), %vm285_vm0, %v858_v0  ;;  %287 = vst.msk [vmem:[#allocation2 + $0x8] sm:$0xff] (!%p647_p7), %vm285_vm0, %v858_v0 }
  0x3b   : > { %s1014_s7 = scalar_lea.vmem %s1072_s0, %s643_s13  ;;  %s1019_s29 = scalar_lea.vmem %s1073_s1, %s643_s13  ;;  %288 = vst.msk [vmem:[#allocation3] sm:$0xff] (!%p647_p7), %vm285_vm0, %v858_v0  ;;  %289 = vst.msk [vmem:[#allocation3 + $0x8] sm:$0xff] (!%p647_p7), %vm285_vm0, %v858_v0 }
  0x3c   : > { %s277_s12 = scalar_lea.vmem %s1074_s2, %s656_s23  ;;  %s280_s30 = scalar_lea.vmem %s1076_s4, %s1096_s19 }
  0x40 PF: > { %v292_v1 = vld [vmem:[%s229_s28] sm:$0xff]  ;;  %vm293_vm1 = vcmask 261120   ;;  %v382_v4 = vlaneseq  ;;  %s651_s5 = sshll.u32 %s839_s18, 3  ;;  %vm430_vm6 = vcmask 64512   ;;  %vm439_vm9 = vcmask 7168   ;;  %p653_p10 = scmp.ne.s32.totalorder %s839_s18, 1 }
  0x41   : > { %v290_v2 = vld [vmem:[%s277_s12] sm:$0xff]  ;;  %660 = vmatprep.subr.msk.mxu0 %vm293_vm1, %v292_v1  ;;  %v291_v3 = vld [vmem:[%s277_s12 + $0x8] sm:$0xff]  ;;  %v388_v6 = vstv %s651_s5  ;;  %vm473_vm10 = vcmask (!%p653_p10), 31744   ;;  %vm524_vm11 = vcmask (!%p653_p10), 0  }
  0x42   : > { %662 = vmatprep.mubr.msk.f32.mxu0 %vm293_vm1, %v290_v2  ;;  %661 = vmatpush3.xpose.msk.msra.mxu0 %vm293_vm1, %v292_v1  ;;  %v386_v5 = vand.u32 127, %v382_v4  ;;  %v383_v17 = vshrl.u32 %v382_v4, 7  ;;  %v428_v31 = vld [vmem:[#allocation2] sm:$0xff]  ;;  %v442_v32 = vld [vmem:[#allocation3] sm:$0xff]  ;;  %v429_v37 = vld [vmem:[#allocation2 + $0x8] sm:$0xff] }
  0x43   : > { %v443_v38 = vld [vmem:[#allocation3 + $0x8] sm:$0xff]  ;;  %v471_v43 = vld [vmem:[%s1014_s7] sm:$0xff] (!%p653_p10) }
  0x44   : > { %v389_v7 = vadd.s32 %v388_v6, %v386_v5  ;;  %v384_v19 = vadd.s32 8, %v383_v17  ;;  %v394_v20 = vand.u32 7, %v383_v17  ;;  %v472_v44 = vld [vmem:[%s1019_s29] sm:$0xff] (!%p653_p10)  ;;  %v474_v45 = vsel (!%p653_p10), %vm473_vm10, %v471_v43, -inf }
  0x45   : > { %663 = vmatmul.mubr.msk.f32.vlgmr.msra.gmra.mrb[0].mxu0 %vm293_vm1, %v291_v3  ;;  %v486_v46 = vsel (!%p653_p10), %vm473_vm10, %v472_v44, -inf }
  0x46   : > { %v415_v8 = vsub.s32 0, %v389_v7  ;;  %vm414_vm2 = vcmp.lt.s32.totalorder %v389_v7, 0  ;;  %v401_v22 = vand.u32 7, %v384_v19 }
  0x48   : > { %v652_v9 = vmin.u32 %v415_v8, %v389_v7 }
  0x4a   : > { %v418_v10 = vand.u32 7, %v652_v9 }
  0x4c   : > { %v419_v11 = vsub.s32 0, %v418_v10 }
  0x4e   : > { %v420_v13 = vsel %vm414_vm2, %v419_v11, %v418_v10 }
  0x4f   : > { %vm421_vm3 = vcmp.ne.s32.totalorder %v420_v13, 0  ;;  %vm422_vm4 = vcmp.lt.s32.totalorder %v420_v13, 0  ;;  %v424_v18 = vadd.s32 8, %v420_v13 }
  0x50   : > { %vm423_vm5 = vmand %vm422_vm4, %vm421_vm3 }
  0x51   : > { %v425_v21 = vsel %vm423_vm5, %v424_v18, %v420_v13 }
  0x52   : > { %vm426_vm7 = vcmp.eq.s32.totalorder %v394_v20, %v425_v21  ;;  %vm427_vm8 = vcmp.eq.s32.totalorder %v401_v22, %v425_v21 }
 0x118   : > { %v664_v12 = vpop.f32.mrb[0].mxu0 }
 0x119   : > { %v380_v14 = vmul.f32 1.442695, %v664_v12  ;;  %v369_v15 = vpop.f32.mrb[1].mxu0 }
 0x11a   : > { %v378_v16 = vmul.f32 1.442695, %v369_v15 }
 0x11b   : > { %739 = vpow2.f32 %v380_v14 }
 0x11c   : > { %741 = vpow2.f32 %v378_v16 }
 0x125   : > { %v740_v23 = vpop.eup %739 }
 0x126   : > { %v742_v24 = vpop.eup %741  ;;  %v445_v28 = vsel %vm427_vm8, %v740_v23, 0.0  ;;  %v434_v29 = vsel %vm430_vm6, %v740_v23, 0.0 }
 0x127   : > { %v431_v25 = vsel %vm430_vm6, %v742_v24, 0.0  ;;  %v444_v26 = vsel %vm426_vm7, %v742_v24, 0.0  ;;  %v449_v30 = vsel %vm430_vm6, %v445_v28, 0.0 }
 0x128   : > { %432 = vadd.xlane.f32.xlu0 %v431_v25  ;;  %v446_v27 = vsel %vm430_vm6, %v444_v26, 0.0 }
 0x129   : > { %447 = vadd.xlane.f32.xlu1 %v446_v27 }
 0x12c   : > { %435 = vadd.xlane.f32.xlu0 %v434_v29 }
 0x12d   : > { %450 = vadd.xlane.f32.xlu1 %v449_v30 }
 0x130   : > { %475 = vmax.xlane.f32.xlu0 (!%p653_p10), %v474_v45 }
 0x134   : > { %487 = vmax.xlane.f32.xlu0 (!%p653_p10), %v486_v46 }
 0x1b5   : > { %v433_v33 = vpop.xlane.xlu0 %432 }
 0x1b6   : > { %v437_v34 = vadd.f32 %v433_v33, %v428_v31  ;;  %v448_v35 = vpop.xlane.xlu1 %447 }
 0x1b7   : > { %v452_v36 = vadd.f32 %v448_v35, %v442_v32  ;;  %459 = sbr.rel (%p653_p10) target bundleno = 998 (0x3e6), region = 48 }
 0x1b8   : > { %440 = vst.msk [vmem:[#allocation2] sm:$0xff] %vm439_vm9, %v437_v34 }
 0x1b9   : > { %454 = vst.msk [vmem:[#allocation3] sm:$0xff] %vm439_vm9, %v452_v36  ;;  %v436_v39 = vpop.xlane.xlu0 %435 }
 0x1ba   : > { %v438_v40 = vadd.f32 %v436_v39, %v429_v37  ;;  %v451_v41 = vpop.xlane.xlu1 %450 }
 0x1bb   : > { %v453_v42 = vadd.f32 %v451_v41, %v443_v38 }
 0x1bc   : > { %441 = vst.msk [vmem:[#allocation2 + $0x8] sm:$0xff] %vm439_vm9, %v438_v40 }
 0x1bd   : > { %455 = vst.msk [vmem:[#allocation3 + $0x8] sm:$0xff] %vm439_vm9, %v453_v42  ;;  %v476_v47 = vpop.xlane.xlu0 (!%p653_p10), %475 }
 0x1be   : > { %v477_v48 = vsub.f32 %v471_v43, %v476_v47 }
 0x1bf   : > { %v460_v6 = vld [vmem:[#allocation2] sm:$0xff] }
 0x1c0   : > { %v478_v49 = vmul.f32 1.442695, %v477_v48  ;;  %v462_v8 = vld [vmem:[#allocation3] sm:$0xff] }
 0x1c1   : > { %v488_v50 = vpop.xlane.xlu0 %487 }
 0x1c2   : > { %743 = vpow2.f32 %v478_v49  ;;  %v489_v51 = vsub.f32 %v472_v44, %v488_v50 }
 0x1c3   : > { %v461_v7 = vld [vmem:[#allocation2 + $0x8] sm:$0xff] }
 0x1c4   : > { %v490_v52 = vmul.f32 1.442695, %v489_v51  ;;  %v463_v9 = vld [vmem:[#allocation3 + $0x8] sm:$0xff]  ;;  %v464_v10 = vadd.f32 %v461_v7, %v460_v6 }
 0x1c5   : > { %v465_v11 = vadd.f32 %v463_v9, %v462_v8 }
 0x1c6   : > { %745 = vpow2.f32 %v490_v52 }
 0x1cc   : > { %v744_v53 = vpop.eup %743 }
 0x1cd   : > { %v480_v54 = vsel %vm473_vm10, %v744_v53, 0.0 }
 0x1ce   : > { %481 = vadd.xlane.f32.xlu1 %v480_v54 }
 0x1d0   : > { %v746_v55 = vpop.eup %745 }
 0x1d1   : > { %v492_v56 = vsel %vm473_vm10, %v746_v55, 0.0 }
 0x1d2   : > { %493 = vadd.xlane.f32.xlu1 %v492_v56 }
 0x25b   : > { %v482_v57 = vpop.xlane.xlu1 %481 }
 0x25c   : > { %747 = vlog2.f32 %v482_v57 }
 0x25f   : > { %v494_v58 = vpop.xlane.xlu1 %493 }
 0x260   : > { %749 = vlog2.f32 %v494_v58 }
 0x261   : > { %751 = vrcp.f32 %v494_v58 }
 0x262   : > { %753 = vlog2.f32 %v464_v10 }
 0x263   : > { %755 = vlog2.f32 %v465_v11 }
 0x266   : > { %v748_v59 = vpop.eup %747 }
 0x267   : > { %v484_v60 = vmul.f32 0.6931472, %v748_v59 }
 0x269   : > { %v485_v0 = vsub.f32 %v477_v48, %v484_v60 }
 0x26a   : > { %v750_v61 = vpop.eup %749 }
 0x26b   : > { %v498_v62 = vmul.f32 0.6931472, %v750_v61  ;;  %v752_v63 = vpop.eup %751 }
 0x26c   : > { %v496_v2 = vmul.f32 %v752_v63, %v746_v55  ;;  %v754_v15 = vpop.eup %753 }
 0x26d   : > { %v499_v1 = vsub.f32 %v489_v51, %v498_v62  ;;  %v756_v16 = vpop.eup %755  ;;  %v467_v17 = vmul.f32 0.6931472, %v754_v15 }
 0x26e   : > { %v469_v18 = vmul.f32 0.6931472, %v756_v16 }
 0x26f   : > { %v500_v3 = vsub.f32 %v499_v1, %v485_v0 }
 0x270   : > { %v470_v19 = vsub.f32 %v467_v17, %v469_v18 }
 0x271   : > { %v501_v4 = vmul.f32 %v500_v3, %v496_v2 }
 0x273   : > { %v502_v5 = vsel %vm473_vm10, %v501_v4, 0.0 }
 0x274   : > { %503 = vadd.xlane.f32.xlu0 %v502_v5 }
 0x301   : > { %v504_v12 = vpop.xlane.xlu0 %503 }
 0x302   : > { %v505_v13 = vsub.f32 0.0, %v504_v12 }
 0x304   : > { %v506_v14 = vmul.f32 1.442695, %v505_v13 }
 0x306   : > { %757 = vpow2.f32 %v506_v14 }
 0x310   : > { %v758_v20 = vpop.eup %757 }
 0x311   : > { %v508_v21 = vmul.f32 %v758_v20, %v470_v19 }
 0x313   : > { %v509_v22 = vadd.f32 %v508_v21, %v504_v12 }
 0x315   : > { %v510_v23 = vsel %vm439_vm9, %v509_v22, 0.0 }
 0x316   : > { %511 = vadd.xlane.f32.xlu1 %v510_v23 }
 0x3a3   : > { %v512_v24 = vpop.xlane.xlu1 %511 }
 0x3a4   : > { %v513_v25 = vrot.slane %v512_v24, 4 }
 0x3a6   : > { %v514_v26 = vadd.f32 %v513_v25, %v512_v24 }
 0x3a8   : > { %v515_v27 = vrot.slane %v514_v26, 2 }
 0x3aa   : > { %v516_v28 = vadd.f32 %v515_v27, %v514_v26 }
 0x3ac   : > { %v517_v29 = vrot.slane %v516_v28, 1 }
 0x3ae   : > { %v518_v30 = vadd.f32 %v517_v29, %v516_v28 }
 0x3b0   : > { %665 = vpush %v518_v30 }
 0x3e1   : > { %s666_s18 = spop %665 }
 0x3e2   : > { %s522_s28 = smul.f32 0.125, %s666_s18 }
 0x3e4   : > { %v523_v31 = vstv %s522_s28 }
 0x3e5   : > { %525 = vst.msk [vmem:[%s280_s30] sm:$0x1] %vm524_vm11, %v523_v31 }
 0x3e6 PF: > { %s17_s22 = sadd.s32 1, %s855_s22   ;;  %s1082_s15 = smov %s831_s16 }
 0x3e7   : > { %p14_p12 = scmp.ge.s32.totalorder %s17_s22, 6   ;;  %s1083_s16 = smov %s835_s17 }
 0x3e8   : > { %s1084_s17 = smov %s951_s9  ;;  %s1085_s18 = smov %s847_s20 }
 0x3e9   : > { %s1086_s19 = smov %s851_s21  ;;  %s1087_s20 = smov %s1090_s24 }
 0x3ea   : > { %s1088_s21 = smov %s1094_s25  ;;  %16 = sbr.rel (!%p14_p12) target bundleno = 5 (0x5), region = 93 }
 0x3f1   :  { %543 = vsyncpa [#allocation5], 1 }
 0x3f2   :  { %545 = vsyncpa [#allocation5 + $0x1], 1 }

</bundles_post_ra>
